<compile_context>
chip_gen: v5e
topology: v5e:2x2
jax: 0.10.0
libtpu: 0.0.40
codegen_flags: <defaults>
</compile_context>

<pallas_src>
import jax
import jax.numpy as jnp
from jax import lax
from jax.experimental import pallas as pl
from jax.experimental.pallas import tpu as pltpu


def _downsample_kernel(x_ref, w_ref, o_ref):
    # x_ref: (1, Cin, 2*TH, W)   NCHW input slab            (VMEM)
    # w_ref: (Cout, Cin)         1x1-conv weights, scalars  (SMEM)
    # o_ref: (1, Cout, TH, Wo)   NCHW output slab           (VMEM)
    _, cin, hb, w = x_ref.shape
    _, cout, th, wo = o_ref.shape

    # 0.5-valued pooling matrices so that  p_row @ x @ p_col == 2x2 mean pool.
    # Built from iota + compare (no integer division) so lowering is trivial.
    r_out = lax.broadcasted_iota(jnp.int32, (th, hb), 0)
    r_in = lax.broadcasted_iota(jnp.int32, (th, hb), 1)
    p_row = jnp.where(
        jnp.logical_or(r_in == 2 * r_out, r_in == 2 * r_out + 1), 0.5, 0.0
    ).astype(jnp.float32)

    c_in = lax.broadcasted_iota(jnp.int32, (w, wo), 0)
    c_out = lax.broadcasted_iota(jnp.int32, (w, wo), 1)
    p_col = jnp.where(
        jnp.logical_or(c_in == 2 * c_out, c_in == 2 * c_out + 1), 0.5, 0.0
    ).astype(jnp.float32)

    # 2x2 mean pool per input channel (f32 accumulation, lane-dense tiles).
    pooled = []
    for ci in range(cin):
        x_c = x_ref[0, ci].astype(jnp.float32)                         # (2*TH, W)
        t = jnp.dot(p_row, x_c, preferred_element_type=jnp.float32)    # (TH, W)
        pooled.append(jnp.dot(t, p_col, preferred_element_type=jnp.float32))  # (TH, Wo)

    # Tiny 1x1 channel mix on the VPU: Cout*Cin scalar-broadcast FMAs.
    # TODO(synk): for large channel counts (>= ~64) switch the channel mix to an
    # MXU matmul with bf16 operands / f32 accumulation instead of unrolled FMAs.
    for co in range(cout):
        acc = pooled[0] * w_ref[co, 0]
        for ci in range(1, cin):
            acc = acc + pooled[ci] * w_ref[co, ci]
        o_ref[0, co] = acc.astype(o_ref.dtype)


def _pick_tile_rows(ho, cin, cout, w, wo, itemsize, budget_bytes=6 * 1024 * 1024):
    """Output-row tile TH: divides Ho, multiple of 8 (or == Ho), fits budget."""
    # double-buffered bytes per output row: 2 x (2 input rows * Cin * W + 1 out row * Cout * Wo)
    per_row = 2 * (2 * cin * w + cout * wo) * itemsize
    cap = max(1, budget_bytes // max(per_row, 1))
    if ho <= cap:
        return ho                      # whole H axis in one block (always layout-legal)
    th = min(cap, ho)
    th -= th % 8
    while th >= 8:
        if ho % th == 0:
            return th
        th -= 8
    return ho                          # no aligned divisor fits; fall back to full axis


def downsample(x_nchw, weight):
    """Bilinear 0.5x downsample (align_corners=False) + 1x1 conv, no bias.

    Args:
      x_nchw: (N, Cin, H, W) with even H, W.
      weight: (Cout, Cin, 1, 1) PyTorch Conv2d weight layout.
    Returns:
      (N, Cout, H//2, W//2) in NCHW.
    """
    N, Cin, H, W = x_nchw.shape
    if H % 2 or W % 2:
        # TODO(synk): odd H/W bilinear boundary handling (non-integer scale ratio).
        raise ValueError("downsample expects even spatial dims (H, W)")
    Cout = weight.shape[0]
    Ho, Wo = H // 2, W // 2

    # (Cout, Cin, 1, 1) -> (Cout, Cin); free reshape, f32 scalars for SMEM.
    w_mat = weight.reshape(Cout, Cin).astype(jnp.float32)

    itemsize = jnp.dtype(x_nchw.dtype).itemsize
    TH = _pick_tile_rows(Ho, Cin, Cout, W, Wo, itemsize)
    grid = (N, Ho // TH)

    flops = N * Ho * Wo * Cin * (4 + 2 * Cout)
    bytes_accessed = (
        x_nchw.size * itemsize + w_mat.size * 4 + N * Cout * Ho * Wo * itemsize
    )

    return pl.pallas_call(
        _downsample_kernel,
        out_shape=jax.ShapeDtypeStruct((N, Cout, Ho, Wo), x_nchw.dtype),
        grid=grid,
        in_specs=[
            pl.BlockSpec((1, Cin, 2 * TH, W), lambda n, i: (n, 0, i, 0)),
            pl.BlockSpec(memory_space=pltpu.MemorySpace.SMEM),
        ],
        out_specs=pl.BlockSpec((1, Cout, TH, Wo), lambda n, i: (n, 0, i, 0)),
        compiler_params=pltpu.CompilerParams(
            dimension_semantics=("parallel", "parallel")
        ),
        cost_estimate=pl.CostEstimate(
            flops=flops, transcendentals=0, bytes_accessed=bytes_accessed
        ),
    )(x_nchw, w_mat)


if __name__ == "__main__":
    key = jax.random.PRNGKey(0)
    k_x, k_w = jax.random.split(key)

    # Module config: in_channels=4, s_factor=2  ->  Cout = 6.
    N, Cin, H, W = 2, 4, 16, 16
    s_factor = 2
    Cout = Cin + s_factor

    x = jax.random.normal(k_x, (N, Cin, H, W), dtype=jnp.float32)
    # Deterministic synthetic Conv2d weight (Cout, Cin, 1, 1), no bias.
    weight = jax.random.normal(k_w, (Cout, Cin, 1, 1), dtype=jnp.float32) * 0.1

    y = downsample(x, weight)
    y = jax.block_until_ready(y)

    # Reference: bilinear 0.5x downsample (== 2x2 mean pool for even H, W)
    # followed by the 1x1 conv, in plain JAX.
    Ho, Wo = H // 2, W // 2
    pooled = x.reshape(N, Cin, Ho, 2, Wo, 2).mean(axis=(3, 5))
    ref = jnp.einsum("nchw,oc->nohw", pooled, weight.reshape(Cout, Cin))

    assert y.shape == (N, Cout, Ho, Wo), y.shape
    assert jnp.allclose(y, ref, atol=1e-5, rtol=1e-5), float(jnp.abs(y - ref).max())

    print("KERNEL_OK")
</pallas_src>

<mosaic_0001>
module attributes {stable_mosaic.version = 11 : i64} {
  func.func @_downsample_kernel(%arg0: i32, %arg1: i32, %arg2: memref<1x4x16x16xf32, #tpu.memory_space<vmem>>, %arg3: memref<6x4xf32, #tpu.memory_space<smem>>, %arg4: memref<1x6x8x8xf32, #tpu.memory_space<vmem>>) attributes {dimension_semantics = [#tpu.dimension_semantics<parallel>, #tpu.dimension_semantics<parallel>], iteration_bounds = array<i64: 2, 1>, scalar_prefetch = 0 : i64, scratch_operands = 0 : i64, tpu.core_type = #tpu.core_type<tc>, window_params = [{transform_indices = @transform_0, window_bounds = array<i64: 1, 4, 16, 16>}, {transform_indices = @transform_1, window_bounds = array<i64: 6, 4>}, {transform_indices = @transform_2, window_bounds = array<i64: 1, 6, 8, 8>}]} {
    %0 = tpu.iota {dimensions = array<i32: 0>} : vector<8x16xi32>
    %1 = tpu.iota {dimensions = array<i32: 1>} : vector<8x16xi32>
    %c2_i32 = arith.constant 2 : i32
    %2 = vector.broadcast %c2_i32 : i32 to vector<8x16xi32>
    %3 = arith.muli %2, %0 : vector<8x16xi32>
    %4 = arith.cmpi eq, %1, %3 : vector<8x16xi32>
    %c2_i32_0 = arith.constant 2 : i32
    %5 = vector.broadcast %c2_i32_0 : i32 to vector<8x16xi32>
    %6 = arith.muli %5, %0 : vector<8x16xi32>
    %c1_i32 = arith.constant 1 : i32
    %7 = vector.broadcast %c1_i32 : i32 to vector<8x16xi32>
    %8 = arith.addi %6, %7 : vector<8x16xi32>
    %9 = arith.cmpi eq, %1, %8 : vector<8x16xi32>
    %10 = arith.ori %4, %9 : vector<8x16xi1>
    %cst = arith.constant 5.000000e-01 : f32
    %cst_1 = arith.constant 0.000000e+00 : f32
    %11 = vector.broadcast %cst : f32 to vector<8x16xf32>
    %12 = vector.broadcast %cst_1 : f32 to vector<8x16xf32>
    %13 = arith.select %10, %11, %12 : vector<8x16xi1>, vector<8x16xf32>
    %14 = tpu.iota {dimensions = array<i32: 0>} : vector<16x8xi32>
    %15 = tpu.iota {dimensions = array<i32: 1>} : vector<16x8xi32>
    %c2_i32_2 = arith.constant 2 : i32
    %16 = vector.broadcast %c2_i32_2 : i32 to vector<16x8xi32>
    %17 = arith.muli %16, %15 : vector<16x8xi32>
    %18 = arith.cmpi eq, %14, %17 : vector<16x8xi32>
    %c2_i32_3 = arith.constant 2 : i32
    %19 = vector.broadcast %c2_i32_3 : i32 to vector<16x8xi32>
    %20 = arith.muli %19, %15 : vector<16x8xi32>
    %c1_i32_4 = arith.constant 1 : i32
    %21 = vector.broadcast %c1_i32_4 : i32 to vector<16x8xi32>
    %22 = arith.addi %20, %21 : vector<16x8xi32>
    %23 = arith.cmpi eq, %14, %22 : vector<16x8xi32>
    %24 = arith.ori %18, %23 : vector<16x8xi1>
    %cst_5 = arith.constant 5.000000e-01 : f32
    %cst_6 = arith.constant 0.000000e+00 : f32
    %25 = vector.broadcast %cst_5 : f32 to vector<16x8xf32>
    %26 = vector.broadcast %cst_6 : f32 to vector<16x8xf32>
    %27 = arith.select %24, %25, %26 : vector<16x8xi1>, vector<16x8xf32>
    %c0 = arith.constant 0 : index
    %c0_7 = arith.constant 0 : index
    %c0_8 = arith.constant 0 : index
    %c0_9 = arith.constant 0 : index
    %28 = vector.load %arg2[%c0, %c0_7, %c0_8, %c0_9] : memref<1x4x16x16xf32, #tpu.memory_space<vmem>>, vector<1x1x16x16xf32>
    %29 = vector.shape_cast %28 : vector<1x1x16x16xf32> to vector<16x16xf32>
    %cst_10 = arith.constant dense<0.000000e+00> : vector<8x16xf32>
    %30 = tpu.matmul %13, %29, %cst_10 {dimension_numbers = #tpu.dot_dimension_numbers<[1], [0], [0], [1], [0, 0, 1, 1], [], []>} : vector<8x16xf32>, vector<16x16xf32>, vector<8x16xf32> -> vector<8x16xf32>
    %cst_11 = arith.constant dense<0.000000e+00> : vector<8x8xf32>
    %31 = tpu.matmul %30, %27, %cst_11 {dimension_numbers = #tpu.dot_dimension_numbers<[1], [0], [0], [1], [0, 0, 1, 1], [], []>} : vector<8x16xf32>, vector<16x8xf32>, vector<8x8xf32> -> vector<8x8xf32>
    %c0_12 = arith.constant 0 : index
    %c1 = arith.constant 1 : index
    %c0_13 = arith.constant 0 : index
    %c0_14 = arith.constant 0 : index
    %32 = vector.load %arg2[%c0_12, %c1, %c0_13, %c0_14] : memref<1x4x16x16xf32, #tpu.memory_space<vmem>>, vector<1x1x16x16xf32>
    %33 = vector.shape_cast %32 : vector<1x1x16x16xf32> to vector<16x16xf32>
    %cst_15 = arith.constant dense<0.000000e+00> : vector<8x16xf32>
    %34 = tpu.matmul %13, %33, %cst_15 {dimension_numbers = #tpu.dot_dimension_numbers<[1], [0], [0], [1], [0, 0, 1, 1], [], []>} : vector<8x16xf32>, vector<16x16xf32>, vector<8x16xf32> -> vector<8x16xf32>
    %cst_16 = arith.constant dense<0.000000e+00> : vector<8x8xf32>
    %35 = tpu.matmul %34, %27, %cst_16 {dimension_numbers = #tpu.dot_dimension_numbers<[1], [0], [0], [1], [0, 0, 1, 1], [], []>} : vector<8x16xf32>, vector<16x8xf32>, vector<8x8xf32> -> vector<8x8xf32>
    %c0_17 = arith.constant 0 : index
    %c2 = arith.constant 2 : index
    %c0_18 = arith.constant 0 : index
    %c0_19 = arith.constant 0 : index
    %36 = vector.load %arg2[%c0_17, %c2, %c0_18, %c0_19] : memref<1x4x16x16xf32, #tpu.memory_space<vmem>>, vector<1x1x16x16xf32>
    %37 = vector.shape_cast %36 : vector<1x1x16x16xf32> to vector<16x16xf32>
    %cst_20 = arith.constant dense<0.000000e+00> : vector<8x16xf32>
    %38 = tpu.matmul %13, %37, %cst_20 {dimension_numbers = #tpu.dot_dimension_numbers<[1], [0], [0], [1], [0, 0, 1, 1], [], []>} : vector<8x16xf32>, vector<16x16xf32>, vector<8x16xf32> -> vector<8x16xf32>
    %cst_21 = arith.constant dense<0.000000e+00> : vector<8x8xf32>
    %39 = tpu.matmul %38, %27, %cst_21 {dimension_numbers = #tpu.dot_dimension_numbers<[1], [0], [0], [1], [0, 0, 1, 1], [], []>} : vector<8x16xf32>, vector<16x8xf32>, vector<8x8xf32> -> vector<8x8xf32>
    %c0_22 = arith.constant 0 : index
    %c3 = arith.constant 3 : index
    %c0_23 = arith.constant 0 : index
    %c0_24 = arith.constant 0 : index
    %40 = vector.load %arg2[%c0_22, %c3, %c0_23, %c0_24] : memref<1x4x16x16xf32, #tpu.memory_space<vmem>>, vector<1x1x16x16xf32>
    %41 = vector.shape_cast %40 : vector<1x1x16x16xf32> to vector<16x16xf32>
    %cst_25 = arith.constant dense<0.000000e+00> : vector<8x16xf32>
    %42 = tpu.matmul %13, %41, %cst_25 {dimension_numbers = #tpu.dot_dimension_numbers<[1], [0], [0], [1], [0, 0, 1, 1], [], []>} : vector<8x16xf32>, vector<16x16xf32>, vector<8x16xf32> -> vector<8x16xf32>
    %cst_26 = arith.constant dense<0.000000e+00> : vector<8x8xf32>
    %43 = tpu.matmul %42, %27, %cst_26 {dimension_numbers = #tpu.dot_dimension_numbers<[1], [0], [0], [1], [0, 0, 1, 1], [], []>} : vector<8x16xf32>, vector<16x8xf32>, vector<8x8xf32> -> vector<8x8xf32>
    %c0_27 = arith.constant 0 : index
    %c0_28 = arith.constant 0 : index
    %44 = memref.load %arg3[%c0_27, %c0_28] : memref<6x4xf32, #tpu.memory_space<smem>>
    %45 = vector.broadcast %44 : f32 to vector<8x8xf32>
    %46 = arith.mulf %31, %45 : vector<8x8xf32>
    %c0_29 = arith.constant 0 : index
    %c1_30 = arith.constant 1 : index
    %47 = memref.load %arg3[%c0_29, %c1_30] : memref<6x4xf32, #tpu.memory_space<smem>>
    %48 = vector.broadcast %47 : f32 to vector<8x8xf32>
    %49 = arith.mulf %35, %48 : vector<8x8xf32>
    %50 = arith.addf %46, %49 : vector<8x8xf32>
    %c0_31 = arith.constant 0 : index
    %c2_32 = arith.constant 2 : index
    %51 = memref.load %arg3[%c0_31, %c2_32] : memref<6x4xf32, #tpu.memory_space<smem>>
    %52 = vector.broadcast %51 : f32 to vector<8x8xf32>
    %53 = arith.mulf %39, %52 : vector<8x8xf32>
    %54 = arith.addf %50, %53 : vector<8x8xf32>
    %c0_33 = arith.constant 0 : index
    %c3_34 = arith.constant 3 : index
    %55 = memref.load %arg3[%c0_33, %c3_34] : memref<6x4xf32, #tpu.memory_space<smem>>
    %56 = vector.broadcast %55 : f32 to vector<8x8xf32>
    %57 = arith.mulf %43, %56 : vector<8x8xf32>
    %58 = arith.addf %54, %57 : vector<8x8xf32>
    %c0_35 = arith.constant 0 : index
    %c0_36 = arith.constant 0 : index
    %c0_37 = arith.constant 0 : index
    %c0_38 = arith.constant 0 : index
    %59 = vector.load %arg4[%c0_35, %c0_36, %c0_37, %c0_38] : memref<1x6x8x8xf32, #tpu.memory_space<vmem>>, vector<1x1x8x8xf32>
    %60 = vector.shape_cast %59 : vector<1x1x8x8xf32> to vector<8x8xf32>
    %61 = vector.shape_cast %58 : vector<8x8xf32> to vector<1x1x8x8xf32>
    tpu.vector_store %arg4[%c0_35, %c0_36, %c0_37, %c0_38], %61 {strides = array<i32>} : memref<1x6x8x8xf32, #tpu.memory_space<vmem>>, vector<1x1x8x8xf32>,
    %c1_39 = arith.constant 1 : index
    %c0_40 = arith.constant 0 : index
    %62 = memref.load %arg3[%c1_39, %c0_40] : memref<6x4xf32, #tpu.memory_space<smem>>
    %63 = vector.broadcast %62 : f32 to vector<8x8xf32>
    %64 = arith.mulf %31, %63 : vector<8x8xf32>
    %c1_41 = arith.constant 1 : index
    %c1_42 = arith.constant 1 : index
    %65 = memref.load %arg3[%c1_41, %c1_42] : memref<6x4xf32, #tpu.memory_space<smem>>
    %66 = vector.broadcast %65 : f32 to vector<8x8xf32>
    %67 = arith.mulf %35, %66 : vector<8x8xf32>
    %68 = arith.addf %64, %67 : vector<8x8xf32>
    %c1_43 = arith.constant 1 : index
    %c2_44 = arith.constant 2 : index
    %69 = memref.load %arg3[%c1_43, %c2_44] : memref<6x4xf32, #tpu.memory_space<smem>>
    %70 = vector.broadcast %69 : f32 to vector<8x8xf32>
    %71 = arith.mulf %39, %70 : vector<8x8xf32>
    %72 = arith.addf %68, %71 : vector<8x8xf32>
    %c1_45 = arith.constant 1 : index
    %c3_46 = arith.constant 3 : index
    %73 = memref.load %arg3[%c1_45, %c3_46] : memref<6x4xf32, #tpu.memory_space<smem>>
    %74 = vector.broadcast %73 : f32 to vector<8x8xf32>
    %75 = arith.mulf %43, %74 : vector<8x8xf32>
    %76 = arith.addf %72, %75 : vector<8x8xf32>
    %c0_47 = arith.constant 0 : index
    %c1_48 = arith.constant 1 : index
    %c0_49 = arith.constant 0 : index
    %c0_50 = arith.constant 0 : index
    %77 = vector.load %arg4[%c0_47, %c1_48, %c0_49, %c0_50] : memref<1x6x8x8xf32, #tpu.memory_space<vmem>>, vector<1x1x8x8xf32>
    %78 = vector.shape_cast %77 : vector<1x1x8x8xf32> to vector<8x8xf32>
    %79 = vector.shape_cast %76 : vector<8x8xf32> to vector<1x1x8x8xf32>
    tpu.vector_store %arg4[%c0_47, %c1_48, %c0_49, %c0_50], %79 {strides = array<i32>} : memref<1x6x8x8xf32, #tpu.memory_space<vmem>>, vector<1x1x8x8xf32>,
    %c2_51 = arith.constant 2 : index
    %c0_52 = arith.constant 0 : index
    %80 = memref.load %arg3[%c2_51, %c0_52] : memref<6x4xf32, #tpu.memory_space<smem>>
    %81 = vector.broadcast %80 : f32 to vector<8x8xf32>
    %82 = arith.mulf %31, %81 : vector<8x8xf32>
    %c2_53 = arith.constant 2 : index
    %c1_54 = arith.constant 1 : index
    %83 = memref.load %arg3[%c2_53, %c1_54] : memref<6x4xf32, #tpu.memory_space<smem>>
    %84 = vector.broadcast %83 : f32 to vector<8x8xf32>
    %85 = arith.mulf %35, %84 : vector<8x8xf32>
    %86 = arith.addf %82, %85 : vector<8x8xf32>
    %c2_55 = arith.constant 2 : index
    %c2_56 = arith.constant 2 : index
    %87 = memref.load %arg3[%c2_55, %c2_56] : memref<6x4xf32, #tpu.memory_space<smem>>
    %88 = vector.broadcast %87 : f32 to vector<8x8xf32>
    %89 = arith.mulf %39, %88 : vector<8x8xf32>
    %90 = arith.addf %86, %89 : vector<8x8xf32>
    %c2_57 = arith.constant 2 : index
    %c3_58 = arith.constant 3 : index
    %91 = memref.load %arg3[%c2_57, %c3_58] : memref<6x4xf32, #tpu.memory_space<smem>>
    %92 = vector.broadcast %91 : f32 to vector<8x8xf32>
    %93 = arith.mulf %43, %92 : vector<8x8xf32>
    %94 = arith.addf %90, %93 : vector<8x8xf32>
    %c0_59 = arith.constant 0 : index
    %c2_60 = arith.constant 2 : index
    %c0_61 = arith.constant 0 : index
    %c0_62 = arith.constant 0 : index
    %95 = vector.load %arg4[%c0_59, %c2_60, %c0_61, %c0_62] : memref<1x6x8x8xf32, #tpu.memory_space<vmem>>, vector<1x1x8x8xf32>
    %96 = vector.shape_cast %95 : vector<1x1x8x8xf32> to vector<8x8xf32>
    %97 = vector.shape_cast %94 : vector<8x8xf32> to vector<1x1x8x8xf32>
    tpu.vector_store %arg4[%c0_59, %c2_60, %c0_61, %c0_62], %97 {strides = array<i32>} : memref<1x6x8x8xf32, #tpu.memory_space<vmem>>, vector<1x1x8x8xf32>,
    %c3_63 = arith.constant 3 : index
    %c0_64 = arith.constant 0 : index
    %98 = memref.load %arg3[%c3_63, %c0_64] : memref<6x4xf32, #tpu.memory_space<smem>>
    %99 = vector.broadcast %98 : f32 to vector<8x8xf32>
    %100 = arith.mulf %31, %99 : vector<8x8xf32>
    %c3_65 = arith.constant 3 : index
    %c1_66 = arith.constant 1 : index
    %101 = memref.load %arg3[%c3_65, %c1_66] : memref<6x4xf32, #tpu.memory_space<smem>>
    %102 = vector.broadcast %101 : f32 to vector<8x8xf32>
    %103 = arith.mulf %35, %102 : vector<8x8xf32>
    %104 = arith.addf %100, %103 : vector<8x8xf32>
    %c3_67 = arith.constant 3 : index
    %c2_68 = arith.constant 2 : index
    %105 = memref.load %arg3[%c3_67, %c2_68] : memref<6x4xf32, #tpu.memory_space<smem>>
    %106 = vector.broadcast %105 : f32 to vector<8x8xf32>
    %107 = arith.mulf %39, %106 : vector<8x8xf32>
    %108 = arith.addf %104, %107 : vector<8x8xf32>
    %c3_69 = arith.constant 3 : index
    %c3_70 = arith.constant 3 : index
    %109 = memref.load %arg3[%c3_69, %c3_70] : memref<6x4xf32, #tpu.memory_space<smem>>
    %110 = vector.broadcast %109 : f32 to vector<8x8xf32>
    %111 = arith.mulf %43, %110 : vector<8x8xf32>
    %112 = arith.addf %108, %111 : vector<8x8xf32>
    %c0_71 = arith.constant 0 : index
    %c3_72 = arith.constant 3 : index
    %c0_73 = arith.constant 0 : index
    %c0_74 = arith.constant 0 : index
    %113 = vector.load %arg4[%c0_71, %c3_72, %c0_73, %c0_74] : memref<1x6x8x8xf32, #tpu.memory_space<vmem>>, vector<1x1x8x8xf32>
    %114 = vector.shape_cast %113 : vector<1x1x8x8xf32> to vector<8x8xf32>
    %115 = vector.shape_cast %112 : vector<8x8xf32> to vector<1x1x8x8xf32>
    tpu.vector_store %arg4[%c0_71, %c3_72, %c0_73, %c0_74], %115 {strides = array<i32>} : memref<1x6x8x8xf32, #tpu.memory_space<vmem>>, vector<1x1x8x8xf32>,
    %c4 = arith.constant 4 : index
    %c0_75 = arith.constant 0 : index
    %116 = memref.load %arg3[%c4, %c0_75] : memref<6x4xf32, #tpu.memory_space<smem>>
    %117 = vector.broadcast %116 : f32 to vector<8x8xf32>
    %118 = arith.mulf %31, %117 : vector<8x8xf32>
    %c4_76 = arith.constant 4 : index
    %c1_77 = arith.constant 1 : index
    %119 = memref.load %arg3[%c4_76, %c1_77] : memref<6x4xf32, #tpu.memory_space<smem>>
    %120 = vector.broadcast %119 : f32 to vector<8x8xf32>
    %121 = arith.mulf %35, %120 : vector<8x8xf32>
    %122 = arith.addf %118, %121 : vector<8x8xf32>
    %c4_78 = arith.constant 4 : index
    %c2_79 = arith.constant 2 : index
    %123 = memref.load %arg3[%c4_78, %c2_79] : memref<6x4xf32, #tpu.memory_space<smem>>
    %124 = vector.broadcast %123 : f32 to vector<8x8xf32>
    %125 = arith.mulf %39, %124 : vector<8x8xf32>
    %126 = arith.addf %122, %125 : vector<8x8xf32>
    %c4_80 = arith.constant 4 : index
    %c3_81 = arith.constant 3 : index
    %127 = memref.load %arg3[%c4_80, %c3_81] : memref<6x4xf32, #tpu.memory_space<smem>>
    %128 = vector.broadcast %127 : f32 to vector<8x8xf32>
    %129 = arith.mulf %43, %128 : vector<8x8xf32>
    %130 = arith.addf %126, %129 : vector<8x8xf32>
    %c0_82 = arith.constant 0 : index
    %c4_83 = arith.constant 4 : index
    %c0_84 = arith.constant 0 : index
    %c0_85 = arith.constant 0 : index
    %131 = vector.load %arg4[%c0_82, %c4_83, %c0_84, %c0_85] : memref<1x6x8x8xf32, #tpu.memory_space<vmem>>, vector<1x1x8x8xf32>
    %132 = vector.shape_cast %131 : vector<1x1x8x8xf32> to vector<8x8xf32>
    %133 = vector.shape_cast %130 : vector<8x8xf32> to vector<1x1x8x8xf32>
    tpu.vector_store %arg4[%c0_82, %c4_83, %c0_84, %c0_85], %133 {strides = array<i32>} : memref<1x6x8x8xf32, #tpu.memory_space<vmem>>, vector<1x1x8x8xf32>,
    %c5 = arith.constant 5 : index
    %c0_86 = arith.constant 0 : index
    %134 = memref.load %arg3[%c5, %c0_86] : memref<6x4xf32, #tpu.memory_space<smem>>
    %135 = vector.broadcast %134 : f32 to vector<8x8xf32>
    %136 = arith.mulf %31, %135 : vector<8x8xf32>
    %c5_87 = arith.constant 5 : index
    %c1_88 = arith.constant 1 : index
    %137 = memref.load %arg3[%c5_87, %c1_88] : memref<6x4xf32, #tpu.memory_space<smem>>
    %138 = vector.broadcast %137 : f32 to vector<8x8xf32>
    %139 = arith.mulf %35, %138 : vector<8x8xf32>
    %140 = arith.addf %136, %139 : vector<8x8xf32>
    %c5_89 = arith.constant 5 : index
    %c2_90 = arith.constant 2 : index
    %141 = memref.load %arg3[%c5_89, %c2_90] : memref<6x4xf32, #tpu.memory_space<smem>>
    %142 = vector.broadcast %141 : f32 to vector<8x8xf32>
    %143 = arith.mulf %39, %142 : vector<8x8xf32>
    %144 = arith.addf %140, %143 : vector<8x8xf32>
    %c5_91 = arith.constant 5 : index
    %c3_92 = arith.constant 3 : index
    %145 = memref.load %arg3[%c5_91, %c3_92] : memref<6x4xf32, #tpu.memory_space<smem>>
    %146 = vector.broadcast %145 : f32 to vector<8x8xf32>
    %147 = arith.mulf %43, %146 : vector<8x8xf32>
    %148 = arith.addf %144, %147 : vector<8x8xf32>
    %c0_93 = arith.constant 0 : index
    %c5_94 = arith.constant 5 : index
    %c0_95 = arith.constant 0 : index
    %c0_96 = arith.constant 0 : index
    %149 = vector.load %arg4[%c0_93, %c5_94, %c0_95, %c0_96] : memref<1x6x8x8xf32, #tpu.memory_space<vmem>>, vector<1x1x8x8xf32>
    %150 = vector.shape_cast %149 : vector<1x1x8x8xf32> to vector<8x8xf32>
    %151 = vector.shape_cast %148 : vector<8x8xf32> to vector<1x1x8x8xf32>
    tpu.vector_store %arg4[%c0_93, %c5_94, %c0_95, %c0_96], %151 {strides = array<i32>} : memref<1x6x8x8xf32, #tpu.memory_space<vmem>>, vector<1x1x8x8xf32>,
    return
  }
  func.func @transform_0(%arg0: i32, %arg1: i32) -> (i32, i32, i32, i32) {
    %c0_i32 = arith.constant 0 : i32
    %c0_i32_0 = arith.constant 0 : i32
    %c0_i32_1 = arith.constant 0 : i32
    return %arg0, %c0_i32, %arg1, %c0_i32_0 : i32, i32, i32, i32
  }
  func.func @transform_1(%arg0: i32, %arg1: i32) -> (i32, i32) {
    %c0_i32 = arith.constant 0 : i32
    %c0_i32_0 = arith.constant 0 : i32
    %c0_i32_1 = arith.constant 0 : i32
    return %c0_i32, %c0_i32_0 : i32, i32
  }
  func.func @transform_2(%arg0: i32, %arg1: i32) -> (i32, i32, i32, i32) {
    %c0_i32 = arith.constant 0 : i32
    %c0_i32_0 = arith.constant 0 : i32
    %c0_i32_1 = arith.constant 0 : i32
    return %arg0, %c0_i32, %arg1, %c0_i32_0 : i32, i32, i32, i32
  }
}

</mosaic_0001>

<bundles_post_ra>
// kernel: tpu_custom_call.1
= control target key start
LH: loop header
LB: loop body
LE: loop exit
PB: predicated region body
PF: predicated region fallthrough
CT: control target
= control target key end

     0   :  { %s1163_s0 = inlined_call_operand.hbm [shape: f32[2,4,16,16], index: 0, kind: input, shape index: {}]   ;;  %s1164_s1 = inlined_call_operand.vmem [shape: f32[6,4], index: 1, kind: input, shape index: {}]   ;;  %s1165_s2 = inlined_call_operand.hbm [shape: f32[2,6,8,8], index: 2, kind: output, shape index: {}]  }
   0x1   :  { %1168 = sst [smem:[#allocation14_spill]] %s1163_s0 }
   0x2   :  { %1169 = sst [smem:[#allocation15_spill]] %s1164_s1 }
   0x3   :  { %7 = vsyncpa [#allocation3], 0 }
   0x4   :  { %9 = vsyncpa [#allocation3 + $0x1], 0 }
   0x5   :  { %10 = vsyncpa [#allocation5], 0 }
   0x6   :  { %11 = vsyncpa [#allocation4], 0 }
   0x7   :  { %13 = vsyncpa [#allocation4 + $0x1], 0  ;;  %s923_s9 = smov 0   ;;  %s925_s10 = smov 0  }
   0x8   :  { %s927_s11 = smov 0   ;;  %s929_s12 = smov 0  }
   0x9   :  { %s931_s13 = smov 0   ;;  %s933_s14 = smov 0  }
   0xa LB: > { %1170 = sst [smem:[#allocation11_spill]] %s895_s13  ;;  %s622_s15 = sadd.s32 4294967295, %s899_s14   ;;  %s899_s14 = sphi %s933_s14, %s19_s14   ;;  %s895_s13 = sphi %s931_s13, %s1184_s13   ;;  %s891_s12 = sphi %s929_s12, %s1183_s12   ;;  %s887_s11 = sphi %s927_s11, %s1187_s11   ;;  %s883_s10 = sphi %s925_s10, %s1186_s10   ;;  %s879_s9 = sphi %s923_s9, %s1185_s9  }
   0xb   : > { %s623_s16 = sadd.s32 4294967294, %s899_s14   ;;  %s40_s17 = sadd.s32 1, %s887_s11 }
   0xc   : > { %p47_p0 = scmp.ne.s32.totalorder %s887_s11, %s883_s10  ;;  %p48_p1 = scmp.eq.s32.totalorder %s899_s14, 0 }
   0xd   : > { %p53_p2 = scmp.ne.s32.totalorder %s883_s10, %s879_s9  ;;  %p961_p3 = scmp.eq.s32.totalorder %s622_s15, 0 }
   0xe   : > { %p100_p4 = scmp.eq.s32.totalorder %s622_s15, 1  ;;  %p965_p5 = por %p48_p1, %p47_p0 }
   0xf   : > { %p106_p6 = scmp.eq.s32.totalorder %s623_s16, 1  ;;  %p971_p7 = por %p961_p3, %p53_p2 }
  0x10   : > { %p975_p8 = por %p100_p4, %p47_p0  ;;  %p624_p10 = scmp.ge.s32.totalorder %s899_s14, 1 }
  0x11   : > { %p979_p9 = por %p106_p6, %p53_p2  ;;  %p113_p11 = scmp.lt.s32.totalorder %s899_s14, 3 }
  0x12   : > { %s1176_s1 = sld [smem:[#allocation15_spill]]  ;;  %p626_p13 = scmp.ge.s32.totalorder %s899_s14, 2 }
  0x13   : > { %p988_p12 = pnand %p624_p10, %p113_p11  ;;  %p710_p0 = scmp.lt.s32.totalorder %s899_s14, 2 }
  0x14   : > { %s31_s28 = sadd.s32 1, %s895_s13  ;;  %s136_s29 = sand.u32 1, %s887_s11  }
  0x15   : > { %p697_p1 = pneg %p988_p12  ;;  %p998_p2 = pnand %p710_p0, %p965_p5 }
  0x16   : > { %p33_p6 = scmp.ge.s32.totalorder %s31_s28, 2  ;;  %s901_s30 = smov [#allocation6]  }
  0x17   : > { %p698_p4 = pnand %p697_p1, %p961_p3  ;;  %s627_s3 = sshll.u32 %s136_s29, 6 }
  0x18   : > { %s125_s25 = sshll.u32 %s1176_s1, 4  ;;  %s1189_s28 = smov (%p33_p6, %s31_s28), 0  ;;  %s126_s25 = int_to_ptr.vmem [resolvable:$true] %s125_s25 }
  0x19   : > { %700 = dma.vmem_to_smem (!%p698_p4), %s126_s25, 128, %s901_s30, [#allocation5]  }
  0x1a   : > { %1179 = sst [smem:[#allocation12_spill]] %s1189_s28  ;;  %s35_s4 = ssub.s32 %s895_s13, %s1189_s28 }
  0x1b   : > { %p38_p10 = scmp.eq.s32.totalorder %s35_s4, 0  ;;  %s686_s5 = sshll.u32 %s895_s13, 6 }
  0x1c   : > { %s1180_s0 = sld [smem:[#allocation14_spill]]  ;;  %s140_s15 = scalar_lea.vmem [#allocation2], %s627_s3 }
  0x1d   : > { %s150_s16 = sshll.u32 %s140_s15, 4  ;;  %s137_s24 = scalar_lea.sflag [#allocation3], %s136_s29  ;;  %s151_s16 = int_to_ptr.vmem [resolvable:$true] %s150_s16 }
  0x1e   : > { %s1017_s19 = scalar_select %p38_p10, %s887_s11, %s40_s17  }
  0x1f   : > { %s902_s25 = smov 128   ;;  %s903_s30 = smov 8  }
  0x20   : > { %1181 = sst [smem:[#allocation13_spill]] %s1017_s19  ;;  %162 = sbr.rel (%p988_p12) target bundleno = 339 (0x153), region = 28 }
  0x21   : > { %s1024_s4 = sand.u32 (!%p988_p12), 1, %s883_s10  }
  0x22   : > { %s147_s8 = scalar_lea.hbm %s1180_s0, %s686_s5  ;;  %s631_s3 = sshll.u32 (!%p988_p12), %s1024_s4, 6 }
  0x23   : > { %s148_s23 = sshll.u32 %s147_s8, 4  ;;  %s165_s17 = scalar_lea.sflag (!%p988_p12), [#allocation3], %s1024_s4  ;;  %s149_s23 = int_to_ptr.hbm [resolvable:$true] %s148_s23 }
  0x24   : > { %704 = dma.hbm_to_vmem [thread:$0]  (!%p998_p2), %s149_s23, 1024, %s151_s16, %s137_s24, %s902_s25, %s902_s25, %s903_s30  }
  0x25   : > { %s168_s5 = scalar_lea.vmem [#allocation2], %s631_s3 }
  0x26   : > { %866 = dma.done.wait (%p971_p7), %s165_s17, 1024  }
  0x27   : > { %868 = vsyncadd (%p971_p7), %s165_s17, 4294966272 }
  0x28   : > { %870 = dma.done.wait (%p961_p3), [#allocation5], 128  }
  0x29   : > { %872 = vsyncadd (%p961_p3), [#allocation5], 4294967168 }
  0x2a   : > { %179 = sfence }
  0x2b   : > { %v638_v0 = vld [vmem:[%s168_s5 + $0x18] sm:$0xff]  ;;  %v637_v1 = vld [vmem:[%s168_s5 + $0x10] sm:$0xff]  ;;  %v197_v2 = vlaneseq  ;;  %v219_v4 = vld [vmem:[%s168_s5 + $0x8] sm:$0xff]  ;;  %vm220_vm3 = vcmask 130048   ;;  %v904_v16 = vmov 0.0   ;;  %v905_v18 = vmov 0.5  }
  0x2c   : > { %284 = vmatpush.msra.mxu2 %v638_v0  ;;  %v650_v3 = vld [vmem:[%s168_s5 + $0x38] sm:$0xff]  ;;  %v218_v5 = vld [vmem:[%s168_s5] sm:$0xff]  ;;  %238 = vmatpush.msra.mxu0 %v219_v4  ;;  %v644_v8 = vld [vmem:[%s168_s5 + $0x28] sm:$0xff]  ;;  %s1044_s18 = sld [smem:[#allocation6]]  ;;  %vm420_vm10 = vcmask 64512  }
  0x2d   : > { %v198_v6 = vshrl.u32 %v197_v2, 7  ;;  %v200_v7 = vand.u32 127, %v197_v2  ;;  %v649_v9 = vld [vmem:[%s168_s5 + $0x30] sm:$0xff]  ;;  %v643_v11 = vld [vmem:[%s168_s5 + $0x20] sm:$0xff]  ;;  %s1046_s20 = sld [smem:[#allocation6 + $0x80]] }
  0x2e   : > { %285 = vmatpush.msra.mxu2 %v637_v1  ;;  %239 = vmatpush.msra.mxu0 %v218_v5  ;;  %s1048_s26 = sld [smem:[#allocation6 + $0x100]] }
  0x2f   : > { %v201_v10 = vmul.u32 2, %v198_v6  ;;  %v207_v12 = vadd.s32 8, %v198_v6  ;;  %v208_v13 = vmul.u32 2, %v200_v7  ;;  %s1050_s27 = sld [smem:[#allocation6 + $0x180]] }
  0x30   : > { %376 = vmatpush.msrb.mxu2 %v650_v3  ;;  %330 = vmatpush.msrb.mxu0 %v644_v8  ;;  %s1052_s29 = sld [smem:[#allocation6 + $0x200]] }
  0x31   : > { %vm202_vm0 = vcmp.eq.s32.totalorder %v200_v7, %v201_v10  ;;  %v203_v14 = vadd.s32 1, %v201_v10  ;;  %v211_v15 = vadd.s32 1, %v208_v13  ;;  %vm210_vm1 = vcmp.eq.s32.totalorder %v207_v12, %v208_v13  ;;  %s1054_s6 = sld [smem:[#allocation6 + $0x280]] }
  0x32   : > { %377 = vmatpush.msrb.mxu2 %v649_v9  ;;  %331 = vmatpush.msrb.mxu0 %v643_v11  ;;  %vm209_vm7 = vcmp.eq.s32.totalorder %v198_v6, %v208_v13  ;;  %s1056_s7 = sld [smem:[#allocation6 + $0x1]]  ;;  %v406_v24 = vstv %s1044_s18 }
  0x33   : > { %vm204_vm2 = vcmp.eq.s32.totalorder %v200_v7, %v203_v14  ;;  %vm213_vm4 = vcmp.eq.s32.totalorder %v207_v12, %v211_v15  ;;  %vm212_vm8 = vcmp.eq.s32.totalorder %v198_v6, %v211_v15  ;;  %s1058_s8 = sld [smem:[#allocation6 + $0x81]]  ;;  %v423_v25 = vstv %s1046_s20 }
  0x34   : > { %vm205_vm5 = vmor %vm202_vm0, %vm204_vm2  ;;  %s1060_s15 = sld [smem:[#allocation6 + $0x101]]  ;;  %v440_v26 = vstv %s1048_s26 }
  0x35   : > { %v206_v17 = vsel %vm205_vm5, 0.5, %v904_v16  ;;  %vm215_vm6 = vmor %vm210_vm1, %vm213_vm4  ;;  %s1062_s16 = sld [smem:[#allocation6 + $0x181]]  ;;  %v457_v27 = vstv %s1050_s27 }
  0x36   : > { %639 = vmatmul.msk.f32.vlgmr.msra.gmra.mxu2 %vm220_vm3, %v206_v17  ;;  %633 = vmatmul.msk.f32.vlgmr.msra.gmra.mxu0 %vm220_vm3, %v206_v17  ;;  %vm214_vm9 = vmor %vm209_vm7, %vm212_vm8  ;;  %s1064_s23 = sld [smem:[#allocation6 + $0x201]]  ;;  %v474_v28 = vstv %s1052_s29  ;;  %s508_s29 = scalar_lea.sflag [#allocation4], %s1024_s4 }
  0x37   : > { %634 = vmatpush.msk.msra.mxu1 %vm215_vm6, %v905_v18  ;;  %640 = vmatpush.msk.msra.mxu3 %vm215_vm6, %v905_v18  ;;  %s1066_s24 = sld [smem:[#allocation6 + $0x281]]  ;;  %v491_v29 = vstv %s1054_s6 }
  0x38   : > { %s1068_s25 = sld [smem:[#allocation6 + $0x2]]  ;;  %v409_v30 = vstv %s1056_s7 }
  0x39   : > { %635 = vmatpush.msk.msra.mxu1 %vm214_vm9, %v905_v18  ;;  %641 = vmatpush.msk.msra.mxu3 %vm214_vm9, %v905_v18  ;;  %s1070_s30 = sld [smem:[#allocation6 + $0x82]]  ;;  %v426_v31 = vstv %s1058_s8 }
  0x3a   : > { %s1072_s3 = sld [smem:[#allocation6 + $0x102]]  ;;  %v443_v32 = vstv %s1060_s15 }
  0x3b   : > { %652 = vmatpush.msk.msrb.mxu3 %vm215_vm6, %v905_v18  ;;  %646 = vmatpush.msk.msrb.mxu1 %vm215_vm6, %v905_v18  ;;  %s1074_s17 = sld [smem:[#allocation6 + $0x182]]  ;;  %v460_v33 = vstv %s1062_s16  ;;  %s833_s16 = scalar_lea.hbm %s1165_s2, 96 }
  0x3c   : > { %s1076_s5 = sld [smem:[#allocation6 + $0x202]]  ;;  %v477_v34 = vstv %s1064_s23 }
  0x3d   : > { %653 = vmatpush.msk.msrb.mxu3 %vm214_vm9, %v905_v18  ;;  %647 = vmatpush.msk.msrb.mxu1 %vm214_vm9, %v905_v18  ;;  %s1078_s0 = sld [smem:[#allocation6 + $0x282]]  ;;  %v494_v35 = vstv %s1066_s24 }
  0x3e   : > { %651 = vmatmul.msk.f32.vlgmr.msrb.gmra.mxu2 %vm220_vm3, %v206_v17  ;;  %645 = vmatmul.msk.f32.vlgmr.msrb.gmra.mxu0 %vm220_vm3, %v206_v17  ;;  %s1080_s1 = sld [smem:[#allocation6 + $0x3]]  ;;  %v413_v36 = vstv %s1068_s25 }
  0x3f   : > { %s1082_s28 = sld [smem:[#allocation6 + $0x83]]  ;;  %v430_v37 = vstv %s1070_s30 }
  0x40   : > { %s1087_s13 = sld [smem:[#allocation6 + $0x103]]  ;;  %v447_v38 = vstv %s1072_s3 }
  0x41   : > { %s1093_s19 = sld [smem:[#allocation6 + $0x183]]  ;;  %v464_v41 = vstv %s1074_s17 }
  0x42   : > { %s1099_s18 = sld [smem:[#allocation6 + $0x203]]  ;;  %v481_v42 = vstv %s1076_s5 }
  0x43   : > { %s1105_s20 = sld [smem:[#allocation6 + $0x283]]  ;;  %v498_v43 = vstv %s1078_s0  ;;  %s687_s0 = smul.u32 48, %s1024_s4 }
  0x44   : > { %v417_v44 = vstv %s1080_s1  ;;  %s688_s1 = smul.u32 48, %s891_s12 }
  0x45   : > { %v434_v62 = vstv %s1082_s28 }
  0x46   : > { %v451_v63 = vstv %s1087_s13  ;;  %s520_s28 = scalar_lea.hbm %s1165_s2, %s688_s1 }
  0x47   : > { %v468_v0 = vstv %s1093_s19  ;;  %s195_s19 = scalar_lea.vmem [#allocation7], %s687_s0  ;;  %s523_s27 = sshll.u32 %s520_s28, 4  ;;  %s524_s27 = int_to_ptr.hbm [resolvable:$true] %s523_s27 }
  0x48   : > { %v485_v4 = vstv %s1099_s18  ;;  %s521_s26 = sshll.u32 %s195_s19, 4  ;;  %s827_s6 = sshra.s32 %s524_s27, 4  ;;  %s522_s26 = int_to_ptr.vmem [resolvable:$true] %s521_s26  ;;  %s828_s6 = int_to_ptr.hbm [resolvable:$true] %s827_s6 }
  0x49   : > { %v502_v8 = vstv %s1105_s20  ;;  %s829_s7 = scalar_lea.hbm %s828_s6, 48  ;;  %p834_p11 = scmp.lt.s32.totalorder %s828_s6, %s1165_s2 }
  0x4a   : > { %p830_p3 = scmp.ne.s32.totalorder %s828_s6, %s829_s7  ;;  %p835_p12 = scmp.lt.s32.totalorder %s833_s16, %s829_s7 }
  0x4c   : > { %p831_p5 = pnand %p830_p3, %p975_p8  ;;  %p836_p0 = por %p835_p12, %p834_p11 }
  0x4e   : > { %p832_p7 = pneg %p831_p5 }
  0x50   : > { %p837_p1 = pnand %p836_p0, %p832_p7 }
  0xb3   : > { %v241_v19 = vpop.f32.mrf.mxu0 }
  0xb4   : > { %636 = vmatmul.msk.f32.vlgmr.msra.gmra.mxu1 %vm220_vm3, %v241_v19 }
  0xb9   : > { %v287_v20 = vpop.f32.mrf.mxu2 }
  0xba   : > { %642 = vmatmul.msk.f32.vlgmr.msra.gmra.mxu3 %vm220_vm3, %v287_v20 }
  0xbb   : > { %v333_v21 = vpop.f32.mrf.mxu0 }
  0xbc   : > { %648 = vmatmul.msk.f32.vlgmr.msrb.gmra.mxu1 %vm220_vm3, %v333_v21 }
  0xc1   : > { %v379_v22 = vpop.f32.mrf.mxu2 }
  0xc2   : > { %654 = vmatmul.msk.f32.vlgmr.msrb.gmra.mxu3 %vm220_vm3, %v379_v22 }
 0x131   : > { %v264_v23 = vpop.f32.mrf.mxu1 }
 0x132   : > { %v407_v45 = vmul.f32 %v406_v24, %v264_v23  ;;  %v424_v49 = vmul.f32 %v423_v25, %v264_v23  ;;  %v441_v50 = vmul.f32 %v440_v26, %v264_v23  ;;  %v458_v51 = vmul.f32 %v457_v27, %v264_v23 }
 0x133   : > { %v475_v61 = vmul.f32 %v474_v28, %v264_v23  ;;  %v492_v1 = vmul.f32 %v491_v29, %v264_v23 }
 0x139   : > { %v356_v40 = vpop.f32.mrf.mxu1 }
 0x13a   : > { %v414_v54 = vmul.f32 %v413_v36, %v356_v40  ;;  %v431_v55 = vmul.f32 %v430_v37, %v356_v40  ;;  %v448_v56 = vmul.f32 %v447_v38, %v356_v40  ;;  %v465_v3 = vmul.f32 %v464_v41, %v356_v40 }
 0x13b   : > { %v482_v6 = vmul.f32 %v481_v42, %v356_v40  ;;  %v499_v7 = vmul.f32 %v498_v43, %v356_v40 }
 0x13d   : > { %v310_v39 = vpop.f32.mrf.mxu3 }
 0x13e   : > { %v410_v46 = vmul.f32 %v409_v30, %v310_v39  ;;  %v427_v47 = vmul.f32 %v426_v31, %v310_v39  ;;  %v444_v48 = vmul.f32 %v443_v32, %v310_v39  ;;  %v461_v52 = vmul.f32 %v460_v33, %v310_v39 }
 0x13f   : > { %v478_v53 = vmul.f32 %v477_v34, %v310_v39  ;;  %v495_v57 = vmul.f32 %v494_v35, %v310_v39 }
 0x140   : > { %v411_v58 = vadd.f32 %v410_v46, %v407_v45  ;;  %v428_v59 = vadd.f32 %v427_v47, %v424_v49  ;;  %v445_v60 = vadd.f32 %v444_v48, %v441_v50  ;;  %v462_v2 = vadd.f32 %v461_v52, %v458_v51 }
 0x141   : > { %v479_v5 = vadd.f32 %v478_v53, %v475_v61  ;;  %v496_v12 = vadd.f32 %v495_v57, %v492_v1 }
 0x142   : > { %v415_v9 = vadd.f32 %v414_v54, %v411_v58  ;;  %v432_v10 = vadd.f32 %v431_v55, %v428_v59  ;;  %v449_v11 = vadd.f32 %v448_v56, %v445_v60  ;;  %v466_v18 = vadd.f32 %v465_v3, %v462_v2 }
 0x143   : > { %v483_v21 = vadd.f32 %v482_v6, %v479_v5  ;;  %v500_v25 = vadd.f32 %v499_v7, %v496_v12 }
 0x145   : > { %v402_v13 = vpop.f32.mrf.mxu3 }
 0x146   : > { %v418_v14 = vmul.f32 %v417_v44, %v402_v13  ;;  %v435_v15 = vmul.f32 %v434_v62, %v402_v13  ;;  %v452_v16 = vmul.f32 %v451_v63, %v402_v13  ;;  %v469_v17 = vmul.f32 %v468_v0, %v402_v13 }
 0x147   : > { %v486_v19 = vmul.f32 %v485_v4, %v402_v13  ;;  %v503_v20 = vmul.f32 %v502_v8, %v402_v13 }
 0x148   : > { %v419_v22 = vadd.f32 %v418_v14, %v415_v9  ;;  %v436_v23 = vadd.f32 %v435_v15, %v432_v10  ;;  %v453_v24 = vadd.f32 %v452_v16, %v449_v11  ;;  %v470_v26 = vadd.f32 %v469_v17, %v466_v18 }
 0x149   : > { %v487_v27 = vadd.f32 %v486_v19, %v483_v21  ;;  %v504_v28 = vadd.f32 %v503_v20, %v500_v25 }
 0x14a   : > { %421 = vst.msk [vmem:[%s195_s19] sm:$0xff] %vm420_vm10, %v419_v22 }
 0x14b   : > { %662 = vst.msk [vmem:[%s195_s19 + $0x8] sm:$0xff] %vm420_vm10, %v436_v23 }
 0x14c   : > { %667 = vst.msk [vmem:[%s195_s19 + $0x10] sm:$0xff] %vm420_vm10, %v453_v24 }
 0x14d   : > { %672 = vst.msk [vmem:[%s195_s19 + $0x18] sm:$0xff] %vm420_vm10, %v470_v26 }
 0x14e   : > { %677 = vst.msk [vmem:[%s195_s19 + $0x20] sm:$0xff] %vm420_vm10, %v487_v27 }
 0x14f   : > { %682 = vst.msk [vmem:[%s195_s19 + $0x28] sm:$0xff] %vm420_vm10, %v504_v28 }
 0x150   : > { %840 = shalt.err (!%p837_p1)
}
 0x151   : > { %s906_s4 = smov 128   ;;  %s907_s25 = smov 8  }
 0x152   : > { %695 = dma.vmem_to_hbm [thread:$0]  (%p975_p8), %s522_s26, 768, %s524_s27, %s508_s29, %s906_s4, %s906_s4, %s907_s25  }
 0x153 PF: > { %s538_s30 = sand.u32 1, %s879_s9   ;;  %p706_p2 = pnand %p626_p13, %p979_p9 }
 0x154   : > { %s539_s3 = scalar_lea.sflag [#allocation4], %s538_s30 }
 0x155   : > { %p707_p4 = pneg %p706_p2 }
 0x157   : > { %874 = dma.done.wait (%p707_p4), %s539_s3, 768  }
 0x158   : > { %876 = vsyncadd (%p707_p4), %s539_s3, 4294966528  ;;  %s19_s14 = sadd.s32 1, %s899_s14   ;;  %s1182_s17 = sld [smem:[#allocation13_spill]] }
 0x159   : > { %p16_p6 = scmp.ge.s32.totalorder %s19_s14, 4   ;;  %s1183_s12 = sld [smem:[#allocation11_spill]] }
 0x15a   : > { %s1184_s13 = sld [smem:[#allocation12_spill]]  ;;  %s1185_s9 = smov %s883_s10 }
 0x15b   : > { %s1186_s10 = smov %s887_s11  ;;  %18 = sbr.rel (!%p16_p6) target bundleno = 10 (0xa), region = 86 }
 0x15e   : > { %s1187_s11 = smov %s1182_s17 }
 0x160   :  { %545 = vsyncpa [#allocation3], 1 }
 0x161   :  { %547 = vsyncpa [#allocation3 + $0x1], 1 }
 0x162   :  { %548 = vsyncpa [#allocation4], 1 }
 0x163   :  { %550 = vsyncpa [#allocation4 + $0x1], 1 }
 0x164   :  { %551 = vsyncpa [#allocation5], 1 }
 0x165   :  { %553 = vsyncpa [#allocation5 + $0x1], 1 }

</bundles_post_ra>
